<compile_context>
chip_gen: v6e
topology: v6e:2x2x1
jax: 0.10.0
libtpu: 0.0.40
codegen_flags: <defaults>
</compile_context>

<pallas_src>
import functools

import jax
import jax.numpy as jnp
from jax.experimental import pallas as pl
from jax.experimental.pallas import tpu as pltpu


def _mlp_kernel(x_ref, w1_ref, b1_ref, w2_ref, b2_ref, o_ref):
    # Cast x to the MXU dtype per tile (no separate wrapper-side HBM pass).
    x = x_ref[...].astype(w1_ref.dtype)
    # Linear(in_dim, 128) + ReLU: bf16 MXU matmul, f32 accumulate/bias/ReLU.
    h = jnp.dot(x, w1_ref[...], preferred_element_type=jnp.float32)
    h = jnp.maximum(h + b1_ref[...], 0.0)          # b1 is (1,128), broadcasts
    # Linear(128, 32) + ReLU.
    y = jnp.dot(h.astype(w2_ref.dtype), w2_ref[...],
                preferred_element_type=jnp.float32)
    o_ref[...] = jnp.maximum(y + b2_ref[...], 0.0).astype(o_ref.dtype)


def _round_up(x, m):
    return ((x + m - 1) // m) * m


@functools.partial(jax.jit, static_argnames=("block_rows", "matmul_dtype"))
def node_feature_encoder(x, w1, b1, w2, b2, *, block_rows=2048,
                         matmul_dtype=jnp.bfloat16):
    """x: [N, in_dim] -> [N, 32]; same math as the PyTorch module.

    Pass w1/w2 already cast to `matmul_dtype` and b1/b2 as f32 (done once at
    model-load time); the astype() calls below are then no-ops.
    """
    n, in_dim = x.shape
    hid = w1.shape[1]
    out = w2.shape[1]
    block_rows = max(int(block_rows), 16)

    # 16-row granularity satisfies both bf16 (16,128) and f32 (8,128) tiling.
    row_align = 16
    n_aligned = _round_up(max(n, 1), row_align)
    if n_aligned <= block_rows:
        if n_aligned >= 512:
            # Enough work to split across the two v7x TensorCores
            # (grid axis is "parallel"); two steps instead of one.
            eff_block = _round_up(pl.cdiv(n_aligned, 2), row_align)
        else:
            # Tiny N: single grid step, no pipeline overhead at all.
            eff_block = n_aligned
    else:
        steps = pl.cdiv(n_aligned, block_rows)
        steps += steps % 2                 # prefer an even step count (2 TCs)
        eff_block = _round_up(pl.cdiv(n_aligned, steps), row_align)
    grid_steps = pl.cdiv(n, eff_block)     # Pallas clips the edge block

    # Identity casts when params are pre-cast at model-load time.
    w1_c = w1.astype(matmul_dtype)
    w2_c = w2.astype(matmul_dtype)
    b1_c = b1.astype(jnp.float32)
    b2_c = b2.astype(jnp.float32)

    w_bytes = (w1_c.size * w1_c.dtype.itemsize
               + w2_c.size * w2_c.dtype.itemsize
               + (b1_c.size + b2_c.size) * 4)
    x_tile_bytes = eff_block * in_dim * x.dtype.itemsize
    out_tile_bytes = eff_block * out * 4
    # Double-buffered x/out tiles + (double-buffered) resident weights.
    vmem_need = 2 * (x_tile_bytes + out_tile_bytes) + 2 * w_bytes
    # Floor at 32 MiB (fine on every gen's physical VMEM), cap below v7x's
    # 64 MiB physical so huge user-requested blocks still compile safely.
    vmem_limit = int(min(max(int(vmem_need * 1.5) + (2 << 20), 32 << 20),
                         56 << 20))

    cost = pl.CostEstimate(
        flops=2 * n * (in_dim * hid + hid * out),
        transcendentals=0,
        bytes_accessed=(n * in_dim * x.dtype.itemsize
                        + w_bytes
                        + n * out * 4))

    return pl.pallas_call(
        _mlp_kernel,
        out_shape=jax.ShapeDtypeStruct((n, out), jnp.float32),
        grid_spec=pltpu.PrefetchScalarGridSpec(
            num_scalar_prefetch=0,
            grid=(grid_steps,),
            in_specs=[
                # x tile marches down the rows; edge block is clipped.
                pl.BlockSpec((eff_block, in_dim), lambda i: (i, 0)),
                # Weights / biases: full arrays, VMEM-resident every step.
                pl.BlockSpec((in_dim, hid), lambda i: (0, 0)),
                pl.BlockSpec((1, hid), lambda i: (0, 0)),
                pl.BlockSpec((hid, out), lambda i: (0, 0)),
                pl.BlockSpec((1, out), lambda i: (0, 0)),
            ],
            out_specs=pl.BlockSpec((eff_block, out), lambda i: (i, 0)),
        ),
        compiler_params=pltpu.CompilerParams(
            dimension_semantics=("parallel",),
            vmem_limit_bytes=vmem_limit),
        cost_estimate=cost,
    )(x, w1_c, b1_c, w2_c, b2_c)


def init_params(key, in_dim=512, hid=128, out=32, dtype=jnp.float32):
    """Deterministic synthetic parameters (shapes match the nn.Linear layers).

    Stored as [in, out] (transpose of PyTorch's [out, in]) for the kernel.
    """
    k1, k2, k3, k4 = jax.random.split(key, 4)
    lim1 = 1.0 / jnp.sqrt(in_dim)
    lim2 = 1.0 / jnp.sqrt(hid)
    w1 = jax.random.uniform(k1, (in_dim, hid), dtype, -lim1, lim1)
    b1 = jax.random.uniform(k2, (1, hid), dtype, -lim1, lim1)
    w2 = jax.random.uniform(k3, (hid, out), dtype, -lim2, lim2)
    b2 = jax.random.uniform(k4, (1, out), dtype, -lim2, lim2)
    return w1, b1, w2, b2


if __name__ == "__main__":
    key = jax.random.PRNGKey(0)
    k_x, k_x2, k_p = jax.random.split(key, 3)

    IN_DIM = 512                 # cfg.SOLVER.TYPE != 'TG' -> in_dim = 512
    w1, b1, w2, b2 = init_params(k_p, in_dim=IN_DIM)

    # One-time "model-load" casts, hoisted out of the per-call wrapper.
    w1_k = w1.astype(jnp.bfloat16)
    w2_k = w2.astype(jnp.bfloat16)

    def ref(xx):                 # plain-JAX f32 reference (same math as PyTorch)
        h = jnp.maximum(xx @ w1 + b1, 0.0)
        return jnp.maximum(h @ w2 + b2, 0.0)

    # Small N: single grid step (eff_block = round_up(N,16) = 16).
    x_small = jax.random.normal(k_x, (16, IN_DIM), dtype=jnp.float32)
    y_small = node_feature_encoder(x_small, w1_k, b1, w2_k, b2)
    jax.block_until_ready(y_small)
    assert y_small.shape == (16, 32)
    assert jnp.allclose(y_small, ref(x_small), atol=5e-2, rtol=5e-2)

    # Non-multiple N exercises the clipped edge block and the 2-step
    # (both-TensorCore) grid path.
    x_mid = jax.random.normal(k_x2, (600, IN_DIM), dtype=jnp.float32)
    y_mid = node_feature_encoder(x_mid, w1_k, b1, w2_k, b2)
    jax.block_until_ready(y_mid)
    assert y_mid.shape == (600, 32)
    assert jnp.allclose(y_mid, ref(x_mid), atol=5e-2, rtol=5e-2)

    print("KERNEL_OK")
</pallas_src>

<mosaic_0001>
module attributes {stable_mosaic.version = 11 : i64} {
  func.func @_mlp_kernel(%arg0: i32, %arg1: memref<16x512xf32, #tpu.memory_space<vmem>>, %arg2: memref<512x128xbf16, #tpu.memory_space<vmem>>, %arg3: memref<1x128xf32, #tpu.memory_space<vmem>>, %arg4: memref<128x32xbf16, #tpu.memory_space<vmem>>, %arg5: memref<1x32xf32, #tpu.memory_space<vmem>>, %arg6: memref<16x32xf32, #tpu.memory_space<vmem>>) attributes {dimension_semantics = [#tpu.dimension_semantics<parallel>], iteration_bounds = array<i64: 1>, scalar_prefetch = 0 : i64, scratch_operands = 0 : i64, tpu.core_type = #tpu.core_type<tc>, window_params = [{transform_indices = @transform_0, window_bounds = array<i64: 16, 512>}, {pipeline_mode = #tpu.pipeline_mode<synchronous>, transform_indices = @transform_1, window_bounds = array<i64: 512, 128>}, {pipeline_mode = #tpu.pipeline_mode<synchronous>, transform_indices = @transform_2, window_bounds = array<i64: 1, 128>}, {pipeline_mode = #tpu.pipeline_mode<synchronous>, transform_indices = @transform_3, window_bounds = array<i64: 128, 32>}, {pipeline_mode = #tpu.pipeline_mode<synchronous>, transform_indices = @transform_4, window_bounds = array<i64: 1, 32>}, {transform_indices = @transform_5, window_bounds = array<i64: 16, 32>}]} {
    %c0 = arith.constant 0 : index
    %c0_0 = arith.constant 0 : index
    %0 = vector.load %arg1[%c0, %c0_0] : memref<16x512xf32, #tpu.memory_space<vmem>>, vector<16x512xf32>
    %1 = arith.truncf %0 : vector<16x512xf32> to vector<16x512xbf16>
    %c0_1 = arith.constant 0 : index
    %c0_2 = arith.constant 0 : index
    %2 = vector.load %arg2[%c0_1, %c0_2] : memref<512x128xbf16, #tpu.memory_space<vmem>>, vector<512x128xbf16>
    %cst = arith.constant dense<0.000000e+00> : vector<16x128xf32>
    %3 = tpu.matmul %1, %2, %cst {dimension_numbers = #tpu.dot_dimension_numbers<[1], [0], [0], [1], [0, 0, 1, 1], [], []>} : vector<16x512xbf16>, vector<512x128xbf16>, vector<16x128xf32> -> vector<16x128xf32>
    %c0_3 = arith.constant 0 : index
    %c0_4 = arith.constant 0 : index
    %4 = vector.load %arg3[%c0_3, %c0_4] : memref<1x128xf32, #tpu.memory_space<vmem>>, vector<1x128xf32>
    %5 = vector.broadcast %4 : vector<1x128xf32> to vector<16x128xf32>
    %6 = arith.addf %3, %5 : vector<16x128xf32>
    %cst_5 = arith.constant 0.000000e+00 : f32
    %7 = vector.broadcast %cst_5 : f32 to vector<16x128xf32>
    %8 = arith.maximumf %6, %7 : vector<16x128xf32>
    %9 = arith.truncf %8 : vector<16x128xf32> to vector<16x128xbf16>
    %c0_6 = arith.constant 0 : index
    %c0_7 = arith.constant 0 : index
    %10 = vector.load %arg4[%c0_6, %c0_7] : memref<128x32xbf16, #tpu.memory_space<vmem>>, vector<128x32xbf16>
    %cst_8 = arith.constant dense<0.000000e+00> : vector<16x32xf32>
    %11 = tpu.matmul %9, %10, %cst_8 {dimension_numbers = #tpu.dot_dimension_numbers<[1], [0], [0], [1], [0, 0, 1, 1], [], []>} : vector<16x128xbf16>, vector<128x32xbf16>, vector<16x32xf32> -> vector<16x32xf32>
    %c0_9 = arith.constant 0 : index
    %c0_10 = arith.constant 0 : index
    %12 = vector.load %arg5[%c0_9, %c0_10] : memref<1x32xf32, #tpu.memory_space<vmem>>, vector<1x32xf32>
    %13 = vector.broadcast %12 : vector<1x32xf32> to vector<16x32xf32>
    %14 = arith.addf %11, %13 : vector<16x32xf32>
    %cst_11 = arith.constant 0.000000e+00 : f32
    %15 = vector.broadcast %cst_11 : f32 to vector<16x32xf32>
    %16 = arith.maximumf %14, %15 : vector<16x32xf32>
    %c0_12 = arith.constant 0 : index
    %c0_13 = arith.constant 0 : index
    %17 = vector.load %arg6[%c0_12, %c0_13] : memref<16x32xf32, #tpu.memory_space<vmem>>, vector<16x32xf32>
    tpu.vector_store %arg6[%c0_12, %c0_13], %16 {strides = array<i32>} : memref<16x32xf32, #tpu.memory_space<vmem>>, vector<16x32xf32>,
    return
  }
  func.func @transform_0(%arg0: i32) -> (i32, i32) {
    %c0_i32 = arith.constant 0 : i32
    %c0_i32_0 = arith.constant 0 : i32
    return %arg0, %c0_i32 : i32, i32
  }
  func.func @transform_1(%arg0: i32) -> (i32, i32) {
    %c0_i32 = arith.constant 0 : i32
    %c0_i32_0 = arith.constant 0 : i32
    %c0_i32_1 = arith.constant 0 : i32
    return %c0_i32, %c0_i32_0 : i32, i32
  }
  func.func @transform_2(%arg0: i32) -> (i32, i32) {
    %c0_i32 = arith.constant 0 : i32
    %c0_i32_0 = arith.constant 0 : i32
    %c0_i32_1 = arith.constant 0 : i32
    return %c0_i32, %c0_i32_0 : i32, i32
  }
  func.func @transform_3(%arg0: i32) -> (i32, i32) {
    %c0_i32 = arith.constant 0 : i32
    %c0_i32_0 = arith.constant 0 : i32
    %c0_i32_1 = arith.constant 0 : i32
    return %c0_i32, %c0_i32_0 : i32, i32
  }
  func.func @transform_4(%arg0: i32) -> (i32, i32) {
    %c0_i32 = arith.constant 0 : i32
    %c0_i32_0 = arith.constant 0 : i32
    %c0_i32_1 = arith.constant 0 : i32
    return %c0_i32, %c0_i32_0 : i32, i32
  }
  func.func @transform_5(%arg0: i32) -> (i32, i32) {
    %c0_i32 = arith.constant 0 : i32
    %c0_i32_0 = arith.constant 0 : i32
    return %arg0, %c0_i32 : i32, i32
  }
}

</mosaic_0001>

<bundles_post_ra>
// kernel: node_feature_encoder.1
= control target key start
LH: loop header
LB: loop body
LE: loop exit
PB: predicated region body
PF: predicated region fallthrough
CT: control target
= control target key end

     0   :  { %10 = vsyncpa [#allocation3], 0  ;;  %s835_s0 = inlined_call_operand.vmem [shape: f32[16,512], index: 0, kind: input, shape index: {}]   ;;  %s836_s1 = inlined_call_operand.hbm [shape: bf16[512,128], index: 1, kind: input, shape index: {}]   ;;  %s837_s2 = inlined_call_operand.vmem [shape: f32[1,128], index: 2, kind: input, shape index: {}]   ;;  %s838_s3 = inlined_call_operand.vmem [shape: bf16[128,32], index: 3, kind: input, shape index: {}]   ;;  %s839_s4 = inlined_call_operand.vmem [shape: f32[1,32], index: 4, kind: input, shape index: {}]   ;;  %s840_s5 = inlined_call_operand.hbm [shape: f32[16,32], index: 5, kind: output, shape index: {}]  }
   0x1   :  { %11 = vsyncpa [#allocation4], 0  ;;  %s737_s18 = smov [#allocation2]  }
   0x2   :  { %s19_s19 = sshll.u32 %s737_s18, 4  ;;  %s20_s19 = int_to_ptr.vmem [resolvable:$true] %s19_s19 }
   0x3   :  { %s701_s20 = scalar_lea.vmem %s20_s19, 4096  ;;  %p706_p1 = scmp.lt.s32.totalorder %s20_s19, %s20_s19 }
   0x4   :  { %p702_p0 = scmp.ne.s32.totalorder %s20_s19, %s701_s20  ;;  %p707_p2 = scmp.lt.s32.totalorder %s701_s20, %s701_s20 }
   0x6   :  { %p708_p3 = por %p707_p2, %p706_p1 }
   0x8   :  { %p709_p4 = pnand %p708_p3, %p702_p0 }
   0xa   :  { %712 = shalt.err (!%p709_p4)
}
   0xb   :  { %s738_s21 = smov 64   ;;  %s739_s22 = smov 4  }
   0xc   :  { %25 = dma.hbm_to_vmem [thread:$0]  %s836_s1, 4096, %s20_s19, [#allocation3], %s738_s21, %s738_s21, %s739_s22  }
   0xd   :  { %733 = dma.done.wait [#allocation3], 4096  }
   0xe   :  { %734 = vsyncadd [#allocation3], 4294963200  ;;  %v653_v0 = vld [vmem:[#allocation2 + $0x78] sm:$0xff]   ;;  %v657_v4 = vld [vmem:[#allocation2 + $0x70] sm:$0xff]   ;;  %v740_v39 = vmov 0.0   ;;  %vm741_vm0 = vmmov 0  }
   0xf   :  { %v654_v1 = vld [vmem:[#allocation2 + $0xf8] sm:$0xff]   ;;  %572 = vmatprep.subr.bf16.mxu0 %v653_v0  ;;  %v658_v5 = vld [vmem:[#allocation2 + $0xf0] sm:$0xff]   ;;  %v661_v8 = vld [vmem:[#allocation2 + $0x68] sm:$0xff]   ;;  %vm510_vm1 = vcmask 261120   ;;  %s742_s6 = smov [#allocation5]  }
  0x10   :  { %v655_v2 = vld [vmem:[#allocation2 + $0x38] sm:$0xff]   ;;  %594 = vmatprep.subr.bf16.mxu1 %v654_v1  ;;  %v659_v6 = vld [vmem:[#allocation2 + $0x30] sm:$0xff]   ;;  %v662_v9 = vld [vmem:[#allocation2 + $0xe8] sm:$0xff]   ;;  %s518_s7 = sshll.u32 %s742_s6, 4  ;;  %s519_s7 = int_to_ptr.vmem [resolvable:$true] %s518_s7 }
  0x11   :  { %v656_v3 = vld [vmem:[#allocation2 + $0xb8] sm:$0xff]   ;;  %573 = vmatpush3.bf16.msra.mxu0 %v655_v2  ;;  %v660_v7 = vld [vmem:[#allocation2 + $0xb0] sm:$0xff]   ;;  %v663_v10 = vld [vmem:[#allocation2 + $0x28] sm:$0xff]   ;;  %s713_s8 = scalar_lea.vmem %s519_s7, 256  ;;  %p718_p6 = scmp.lt.s32.totalorder %s519_s7, %s519_s7 }
  0x12   :  { %595 = vmatpush3.bf16.msra.mxu1 %v656_v3  ;;  %574 = vmatprep.subr.bf16.mxu0 %v657_v4  ;;  %v664_v11 = vld [vmem:[#allocation2 + $0xa8] sm:$0xff]   ;;  %v665_v12 = vld [vmem:[#allocation2 + $0x60] sm:$0xff]   ;;  %v669_v16 = vld [vmem:[#allocation2 + $0x58] sm:$0xff]   ;;  %p714_p5 = scmp.ne.s32.totalorder %s519_s7, %s713_s8  ;;  %p719_p7 = scmp.lt.s32.totalorder %s713_s8, %s713_s8 }
  0x13   :  { %596 = vmatprep.subr.bf16.mxu1 %v658_v5  ;;  %v666_v13 = vld [vmem:[#allocation2 + $0xe0] sm:$0xff]   ;;  %v670_v17 = vld [vmem:[#allocation2 + $0xd8] sm:$0xff]   ;;  %v673_v20 = vld [vmem:[#allocation2 + $0x50] sm:$0xff]  }
  0x14   :  { %v667_v14 = vld [vmem:[#allocation2 + $0x20] sm:$0xff]   ;;  %v671_v18 = vld [vmem:[#allocation2 + $0x18] sm:$0xff]   ;;  %v674_v21 = vld [vmem:[#allocation2 + $0xd0] sm:$0xff]   ;;  %p720_p8 = por %p719_p7, %p718_p6 }
  0x15   :  { %575 = vmatpush3.bf16.msra.mxu0 %v659_v6  ;;  %v668_v15 = vld [vmem:[#allocation2 + $0xa0] sm:$0xff]   ;;  %v672_v19 = vld [vmem:[#allocation2 + $0x98] sm:$0xff]   ;;  %v675_v22 = vld [vmem:[#allocation2 + $0x10] sm:$0xff]  }
  0x16   :  { %597 = vmatpush3.bf16.msra.mxu1 %v660_v7  ;;  %576 = vmatprep.subr.bf16.mxu0 %v661_v8  ;;  %v676_v23 = vld [vmem:[#allocation2 + $0x90] sm:$0xff]   ;;  %v677_v24 = vld [vmem:[#allocation2 + $0x48] sm:$0xff]   ;;  %v681_v28 = vld [vmem:[#allocation2 + $0x40] sm:$0xff]   ;;  %p721_p9 = pnand %p720_p8, %p714_p5 }
  0x17   :  { %598 = vmatprep.subr.bf16.mxu1 %v662_v9  ;;  %v678_v25 = vld [vmem:[#allocation2 + $0xc8] sm:$0xff]   ;;  %v682_v29 = vld [vmem:[#allocation2 + $0xc0] sm:$0xff]   ;;  %v39_v34 = vld [vmem:[%s835_s0 + $0x18] sm:$0xff] }
  0x18   :  { %v679_v26 = vld [vmem:[#allocation2 + $0x8] sm:$0xff]   ;;  %v683_v30 = vld [vmem:[#allocation2] sm:$0xff]   ;;  %v43_v36 = vld [vmem:[%s835_s0 + $0x38] sm:$0xff] }
  0x19   :  { %577 = vmatpush3.bf16.msra.mxu0 %v663_v10  ;;  %v680_v27 = vld [vmem:[#allocation2 + $0x88] sm:$0xff]   ;;  %v684_v31 = vld [vmem:[#allocation2 + $0x80] sm:$0xff]   ;;  %v47_v40 = vpack.c.bf16 %v43_v36, %v39_v34  ;;  %v38_v42 = vld [vmem:[%s835_s0 + $0x10] sm:$0xff] }
  0x1a   :  { %599 = vmatpush3.bf16.msra.mxu1 %v664_v11  ;;  %578 = vmatprep.subr.bf16.mxu0 %v665_v12  ;;  %v37_v32 = vld [vmem:[%s835_s0 + $0x8] sm:$0xff]  ;;  %v36_v37 = vld [vmem:[%s835_s0] sm:$0xff]  ;;  %v42_v43 = vld [vmem:[%s835_s0 + $0x30] sm:$0xff] }
  0x1b   :  { %600 = vmatprep.subr.bf16.mxu1 %v666_v13  ;;  %v41_v33 = vld [vmem:[%s835_s0 + $0x28] sm:$0xff]  ;;  %v40_v38 = vld [vmem:[%s835_s0 + $0x20] sm:$0xff]  ;;  %v46_v44 = vpack.c.bf16 %v42_v43, %v38_v42  ;;  %v685_v45 = vld [vmem:[%s838_s3 + $0x38] sm:$0xff]   ;;  %384 = vmatprep.mubr.bf16.mxu1 %v47_v40 }
  0x1c   :  { %v45_v35 = vpack.c.bf16 %v41_v33, %v37_v32  ;;  %v44_v41 = vpack.c.bf16 %v40_v38, %v36_v37  ;;  %v686_v46 = vld [vmem:[%s838_s3 + $0x30] sm:$0xff]   ;;  %v687_v47 = vld [vmem:[%s838_s3 + $0x28] sm:$0xff]   ;;  %v688_v48 = vld [vmem:[%s838_s3 + $0x20] sm:$0xff]  }
  0x1d   :  { %579 = vmatpush3.bf16.msra.mxu0 %v667_v14  ;;  %v689_v49 = vld [vmem:[%s838_s3 + $0x18] sm:$0xff]   ;;  %v690_v50 = vld [vmem:[%s838_s3 + $0x10] sm:$0xff]   ;;  %v691_v51 = vld [vmem:[%s838_s3 + $0x8] sm:$0xff]  }
  0x1e   :  { %601 = vmatpush3.bf16.msra.mxu1 %v668_v15  ;;  %580 = vmatprep.subr.bf16.mxu0 %v669_v16  ;;  %v692_v52 = vld [vmem:[%s838_s3] sm:$0xff]  }
  0x1f   :  { %602 = vmatprep.subr.bf16.mxu1 %v670_v17  ;;  %343 = vmatprep.mubr.bf16.mxu0 %v45_v35  ;;  %v530_v55 = vld [vmem:[%s837_s2] ss:$0 sm:$0xff] }
  0x20   :  { %v563_v9 = vld [vmem:[%s839_s4] ss:$0 sm:$0xff] }
  0x21   :  { %581 = vmatpush3.bf16.msra.mxu0 %v671_v18 }
  0x22   :  { %603 = vmatpush3.bf16.msra.mxu1 %v672_v19  ;;  %582 = vmatprep.subr.bf16.mxu0 %v673_v20 }
  0x23   :  { %604 = vmatprep.subr.bf16.mxu1 %v674_v21 }
  0x25   :  { %583 = vmatpush3.bf16.msra.mxu0 %v675_v22 }
  0x26   :  { %605 = vmatpush3.bf16.msra.mxu1 %v676_v23  ;;  %584 = vmatprep.subr.bf16.mxu0 %v677_v24 }
  0x27   :  { %606 = vmatprep.subr.bf16.mxu1 %v678_v25 }
  0x29   :  { %585 = vmatpush3.bf16.msra.mxu0 %v679_v26 }
  0x2a   :  { %607 = vmatpush3.bf16.msra.mxu1 %v680_v27  ;;  %586 = vmatprep.subr.bf16.mxu0 %v681_v28 }
  0x2b   :  { %608 = vmatprep.subr.bf16.mxu1 %v682_v29 }
  0x2d   :  { %587 = vmatpush3.bf16.msra.mxu0 %v683_v30 }
  0x2e   :  { %609 = vmatpush3.bf16.msra.mxu1 %v684_v31  ;;  %625 = vmatprep.subr.bf16.mxu0 %v740_v39 }
  0x30   :  { %344 = vmatmul.mubr.bf16.vlgmr.msra.gmra.mxu0 %v44_v41 }
  0x31   :  { %385 = vmatmul.mubr.bf16.vlgmr.msra.gmra.mxu1 %v46_v44  ;;  %626 = vmatpush3.bf16.msra.mxu0 %v685_v45 }
  0x32   :  { %627 = vmatprep.subr.bf16.mxu0 %v740_v39  ;;  %641 = vmatprep.mubr.msk.bf16.mxu0 %vm741_vm0, %v740_v39 }
  0x35   :  { %628 = vmatpush3.bf16.msra.mxu0 %v686_v46 }
  0x36   :  { %629 = vmatprep.subr.bf16.mxu0 %v740_v39 }
  0x39   :  { %630 = vmatpush3.bf16.msra.mxu0 %v687_v47 }
  0x3a   :  { %631 = vmatprep.subr.bf16.mxu0 %v740_v39 }
  0x3d   :  { %632 = vmatpush3.bf16.msra.mxu0 %v688_v48 }
  0x3e   :  { %633 = vmatprep.subr.bf16.mxu0 %v740_v39 }
  0x41   :  { %634 = vmatpush3.bf16.msra.mxu0 %v689_v49 }
  0x42   :  { %635 = vmatprep.subr.bf16.mxu0 %v740_v39 }
  0x45   :  { %636 = vmatpush3.bf16.msra.mxu0 %v690_v50 }
  0x46   :  { %637 = vmatprep.subr.bf16.mxu0 %v740_v39 }
  0x49   :  { %638 = vmatpush3.bf16.msra.mxu0 %v691_v51 }
  0x4a   :  { %639 = vmatprep.subr.bf16.mxu0 %v740_v39 }
  0x4d   :  { %640 = vmatpush3.bf16.msra.mxu0 %v692_v52 }
  0xf0   :  { %v588_v53 = vpop.f32.mrf.mxu0 }
  0xf1   :  { %v610_v54 = vpop.f32.mrf.mxu1 }
  0xf2   :  { %v589_v56 = vpop.f32.mrf.mxu0 }
  0xf3   :  { %v590_v57 = vadd.f32 %v589_v56, %v588_v53  ;;  %v611_v58 = vpop.f32.mrf.mxu1 }
  0xf4   :  { %v591_v59 = vpop.f32.mrf.mxu0  ;;  %v612_v63 = vadd.f32 %v611_v58, %v610_v54 }
  0xf5   :  { %v346_v60 = vadd.f32 %v590_v57, %v530_v55  ;;  %v613_v61 = vpop.f32.mrf.mxu1 }
  0xf6   :  { %v592_v62 = vpop.f32.mrf.mxu0 }
  0xf7   :  { %v593_v0 = vadd.f32 %v592_v62, %v591_v59  ;;  %v614_v1 = vpop.f32.mrf.mxu1  ;;  %v387_v2 = vadd.f32 %v612_v63, %v346_v60 }
  0xf8   :  { %v615_v4 = vadd.f32 %v614_v1, %v613_v61 }
  0xf9   :  { %v349_v3 = vadd.f32 %v593_v0, %v530_v55  ;;  %v393_v6 = vmax.f32 %v387_v2, 0.0 }
  0xfb   :  { %v390_v5 = vadd.f32 %v615_v4, %v349_v3 }
  0xfd   :  { %v394_v7 = vmax.f32 %v390_v5, 0.0 }
  0xff   :  { %v395_v8 = vpack.c.bf16 %v394_v7, %v393_v6 }
 0x101   :  { %642 = vmatmul.mubr.bf16.vlgmr.msra.gmra.mxu0 %v395_v8 }
 0x1c1   :  { %v501_v10 = vpop.f32.mrf.mxu0 }
 0x1c2   :  { %v502_v11 = vadd.f32 %v563_v9, %v501_v10 }
 0x1c3   :  { %v643_v12 = vpop.f32.mrf.mxu0 }
 0x1c4   :  { %v508_v13 = vmax.f32 %v502_v11, 0.0 }
 0x1c5   :  { %v504_v14 = vpop.f32.mrf.mxu0 }
 0x1c6   :  { %511 = vst.msk [vmem:[#allocation5] sm:$0xff] %vm510_vm1, %v508_v13  ;;  %v505_v15 = vadd.f32 %v563_v9, %v504_v14 }
 0x1c7   :  { %v644_v16 = vpop.f32.mrf.mxu0 }
 0x1c8   :  { %v509_v17 = vmax.f32 %v505_v15, 0.0 }
 0x1ca   :  { %512 = vst.msk [vmem:[#allocation5 + $0x8] sm:$0xff] %vm510_vm1, %v509_v17 }
 0x1cb   :  { %724 = shalt.err (!%p721_p9)
}
 0x1cc   :  { %s743_s4 = smov 128   ;;  %s744_s9 = smov 8  }
 0x1cd   :  { %524 = dma.vmem_to_hbm [thread:$0]  %s519_s7, 256, %s840_s5, [#allocation4], %s743_s4, %s743_s4, %s744_s9  }
 0x1ce   :  { %735 = dma.done.wait [#allocation4], 256  }
 0x1cf   :  { %736 = vsyncadd [#allocation4], 4294967040 }
 0x1d0   :  { %528 = vsyncpa [#allocation3], 1 }
 0x1d1   :  { %529 = vsyncpa [#allocation4], 1 }

</bundles_post_ra>
